<compile_context>
chip_gen: v6e
topology: v6e:2x2x1
jax: 0.10.0
libtpu: 0.0.40
codegen_flags: <defaults>
</compile_context>

<pallas_src>
import functools
import math

import jax
import jax.numpy as jnp
from jax.experimental import pallas as pl
from jax.experimental.pallas import tpu as pltpu

_LANE = 128
_SUBLANE = 8


def _round_up(n, m):
    return ((n + m - 1) // m) * m


def _cdiv(n, m):
    return (n + m - 1) // m


# ---------------------------------------------------------------------------
# Kernel
# ---------------------------------------------------------------------------
def duel_kernel(x_ref, w1_ref, b1_ref, w2a_ref, b2a_ref, w2v_ref, b2v_ref,
                out_ref, *, h_pad, inv_true_o, matmul_dtype):
    # x arrives already in matmul_dtype (cast hoisted to the wrapper).
    x = x_ref[...]                                            # (TB, D)

    # Fused first layer: adv branch cols [0:Hp], vf branch cols [Hp:2Hp].
    h = jnp.dot(x, w1_ref[...],
                preferred_element_type=jnp.float32)           # (TB, 2*Hp) f32
    h = jnp.maximum(h + b1_ref[...], 0.0)

    # Hp is a multiple of 128 -> tile-aligned split, no lane shuffle.
    h_adv = h[:, :h_pad]                                      # (TB, Hp)
    h_vf = h[:, h_pad:]                                       # (TB, Hp)

    # Advantage head: lane-dense (TB, Hp) @ (Hp, Op) MXU matmul, f32 accum.
    adv = jnp.dot(h_adv.astype(matmul_dtype), w2a_ref[...],
                  preferred_element_type=jnp.float32) + b2a_ref[...]   # (TB, Op)

    # Value head: Hp -> 1 projection as a VPU/XLU reduction (an MXU matmul
    # would waste 127/128 output lanes).  b2_vf is an SMEM scalar.
    v = jnp.sum(h_vf * w2v_ref[...], axis=-1, keepdims=True) + b2v_ref[0]

    # Dueling combine.  Padded adv columns are exact zeros (zero weight cols,
    # zero bias), so summing the padded width equals summing the true O; the
    # mean therefore divides by the TRUE output size.
    adv_mean = jnp.sum(adv, axis=-1, keepdims=True) * inv_true_o
    out_ref[...] = v + adv - adv_mean


# ---------------------------------------------------------------------------
# One-time parameter preparation (hoisted out of the hot path)
# ---------------------------------------------------------------------------
def prepare_duel_params(params, *, matmul_dtype=jnp.bfloat16):
    """Fuse / pad / cast weights once.  Returns a dict to pass to the forward."""
    D = params["w1_adv"].shape[0]
    H = params["w1_adv"].shape[1]
    O = params["w2_adv"].shape[1]
    Hp = _round_up(H, _LANE)            # lane-dense hidden width
    Op = _round_up(O, _LANE)            # lane-dense output width (unmasked vst)

    pad2 = lambda a, r, c: jnp.pad(a, ((0, r - a.shape[0]), (0, c - a.shape[1])))

    w1_cat = jnp.concatenate(
        [pad2(params["w1_adv"], D, Hp), pad2(params["w1_vf"], D, Hp)],
        axis=1).astype(matmul_dtype)                              # (D, 2*Hp)
    b1_cat = jnp.concatenate(
        [pad2(params["b1_adv"], 1, Hp), pad2(params["b1_vf"], 1, Hp)],
        axis=1).astype(jnp.float32)                               # (1, 2*Hp)
    w2_adv = pad2(params["w2_adv"], Hp, Op).astype(matmul_dtype)  # (Hp, Op)
    b2_adv = pad2(params["b2_adv"], 1, Op).astype(jnp.float32)    # (1, Op)
    w2_vf = pad2(params["w2_vf"].T, 1, Hp).astype(jnp.float32)    # (1, Hp)
    b2_vf = params["b2_vf"].reshape(-1).astype(jnp.float32)       # (1,) SMEM scalar

    return dict(
        w1=w1_cat, b1=b1_cat, w2_adv=w2_adv, b2_adv=b2_adv,
        w2_vf=w2_vf, b2_vf=b2_vf,
        meta=dict(D=D, H=H, O=O, Hp=Hp, Op=Op, matmul_dtype=matmul_dtype),
    )


def _vmem_bytes(tb, D, Hp, Op, mm_bytes):
    """Working-set estimate: pipelined x/out + resident weights + f32 h."""
    x_buf = 2 * tb * D * mm_bytes            # double-buffered input stream
    o_buf = 2 * tb * Op * 4                  # double-buffered f32 output
    w_buf = (D * 2 * Hp + Hp * Op) * mm_bytes  # single-buffered weights
    b_buf = (2 * Hp + Op + Hp) * 4
    h_buf = 3 * tb * 2 * Hp * 4              # f32 h + adv/vf slice copies
    return x_buf + o_buf + w_buf + b_buf + h_buf


# ---------------------------------------------------------------------------
# Forward
# ---------------------------------------------------------------------------
def duel_network_forward(x, prepared, *, max_batch_tile=512):
    """x: (B, input_size) f32.  prepared: output of prepare_duel_params."""
    meta = prepared["meta"]
    D, O, Hp, Op = meta["D"], meta["O"], meta["Hp"], meta["Op"]
    mdt = meta["matmul_dtype"]
    mm_bytes = jnp.dtype(mdt).itemsize

    B = x.shape[0]
    assert x.shape[1] == D

    # --- batch tiling -----------------------------------------------------
    B8 = _round_up(max(B, 1), _SUBLANE)
    # >=2 grid steps whenever there is more than one sublane of batch, so the
    # "parallel" axis gives v7x's second TensorCore real work; divisor-friendly
    # TB bounds zero-row padding to < one tile.
    n_tiles = max(_cdiv(B8, max_batch_tile), 2 if B8 > _SUBLANE else 1)
    TB = _round_up(_cdiv(B8, n_tiles), _SUBLANE)

    # Shrink TB until the working set fits a budget that is safe on v7x's
    # 64 MiB physical VMEM (v5e/v6e have 128 MiB, so this is conservative).
    budget = 40 << 20
    while TB > _SUBLANE and _vmem_bytes(TB, D, Hp, Op, mm_bytes) > budget:
        TB = _round_up(TB // 2, _SUBLANE)

    Bp = _round_up(B8, TB)
    grid = (Bp // TB,)

    est = _vmem_bytes(TB, D, Hp, Op, mm_bytes)
    vmem_limit = min(max(int(1.5 * est) + (4 << 20), 32 << 20), 48 << 20)

    # Cast x to the matmul dtype in the wrapper (halves the per-step DMA
    # stream and removes the per-tile in-kernel cast), then pad the batch.
    x_p = jnp.pad(x.astype(mdt), ((0, Bp - B), (0, 0)))        # (Bp, D)

    kernel = functools.partial(duel_kernel, h_pad=Hp, inv_true_o=1.0 / O,
                               matmul_dtype=mdt)

    def resident(shape):
        # Constant block index + single buffer: weights stay put in VMEM.
        return pl.BlockSpec(shape, lambda i, s=shape: (0,) * len(s),
                            pipeline_mode=pl.Buffered(1))

    out = pl.pallas_call(
        kernel,
        out_shape=jax.ShapeDtypeStruct((Bp, Op), jnp.float32),
        grid=grid,
        in_specs=[
            pl.BlockSpec((TB, D), lambda i: (i, 0)),   # x: tiled over batch
            resident((D, 2 * Hp)),                     # fused W1 (resident)
            resident((1, 2 * Hp)),                     # fused b1
            resident((Hp, Op)),                        # W2_adv
            resident((1, Op)),                         # b2_adv
            resident((1, Hp)),                         # w2_vf as a row
            pl.BlockSpec(memory_space=pltpu.MemorySpace.SMEM),  # b2_vf scalar
        ],
        out_specs=pl.BlockSpec((TB, Op), lambda i: (i, 0)),
        compiler_params=pltpu.CompilerParams(
            dimension_semantics=("parallel",),         # megacore on v7x
            vmem_limit_bytes=vmem_limit),
    )(x_p, prepared["w1"], prepared["b1"], prepared["w2_adv"],
      prepared["b2_adv"], prepared["w2_vf"], prepared["b2_vf"])

    return out[:B, :O]


# ---------------------------------------------------------------------------
# Init + reference (for the self-test)
# ---------------------------------------------------------------------------
def init_params(key, input_size, hidden_size, output_size):
    """Deterministic init mimicking nn.Linear defaults (kaiming-uniform-ish)."""
    def linear(key, fan_in, fan_out):
        kw, kb = jax.random.split(key)
        bound = 1.0 / math.sqrt(fan_in)
        # stored as (in, out) so the kernel computes x @ W
        w = jax.random.uniform(kw, (fan_in, fan_out), jnp.float32, -bound, bound)
        b = jax.random.uniform(kb, (1, fan_out), jnp.float32, -bound, bound)
        return w, b

    k1, k2, k3, k4 = jax.random.split(key, 4)
    w1_adv, b1_adv = linear(k1, input_size, hidden_size)
    w2_adv, b2_adv = linear(k2, hidden_size, output_size)
    w1_vf, b1_vf = linear(k3, input_size, hidden_size)
    w2_vf, b2_vf = linear(k4, hidden_size, 1)
    return dict(w1_adv=w1_adv, b1_adv=b1_adv, w2_adv=w2_adv, b2_adv=b2_adv,
                w1_vf=w1_vf, b1_vf=b1_vf, w2_vf=w2_vf, b2_vf=b2_vf)


def duel_network_ref(x, p):
    """Pure-JAX reference of the PyTorch forward."""
    h_adv = jnp.maximum(x @ p["w1_adv"] + p["b1_adv"], 0.0)
    adv = h_adv @ p["w2_adv"] + p["b2_adv"]
    h_vf = jnp.maximum(x @ p["w1_vf"] + p["b1_vf"], 0.0)
    v = h_vf @ p["w2_vf"] + p["b2_vf"]
    return v + adv - jnp.mean(adv, axis=-1, keepdims=True)


if __name__ == "__main__":
    key = jax.random.PRNGKey(0)
    kx, kp = jax.random.split(key)

    B, INPUT, HIDDEN, OUTPUT = 2, 16, 32, 8
    x = jax.random.normal(kx, (B, INPUT), dtype=jnp.float32)
    params = init_params(kp, INPUT, HIDDEN, OUTPUT)

    ref = duel_network_ref(x, params)

    # Exact-precision path (f32 matmul operands).
    prepped_f32 = prepare_duel_params(params, matmul_dtype=jnp.float32)
    out_f32 = jax.block_until_ready(duel_network_forward(x, prepped_f32))
    assert out_f32.shape == (B, OUTPUT)
    assert jnp.allclose(out_f32, ref, atol=1e-4, rtol=1e-4)

    # High-throughput path (bf16 matmul operands, f32 accumulate/elementwise).
    prepped_bf16 = prepare_duel_params(params, matmul_dtype=jnp.bfloat16)
    out_bf16 = jax.block_until_ready(duel_network_forward(x, prepped_bf16))
    assert out_bf16.shape == (B, OUTPUT)
    assert jnp.allclose(out_bf16, ref, atol=5e-2, rtol=5e-2)

    print("KERNEL_OK")
</pallas_src>

<mosaic_0001>
module attributes {stable_mosaic.version = 11 : i64} {
  func.func @duel_kernel(%arg0: i32, %arg1: memref<8x16xf32, #tpu.memory_space<vmem>>, %arg2: memref<16x256xf32, #tpu.memory_space<vmem>>, %arg3: memref<1x256xf32, #tpu.memory_space<vmem>>, %arg4: memref<128x128xf32, #tpu.memory_space<vmem>>, %arg5: memref<1x128xf32, #tpu.memory_space<vmem>>, %arg6: memref<1x128xf32, #tpu.memory_space<vmem>>, %arg7: memref<1xf32, #tpu.memory_space<smem>>, %arg8: memref<8x128xf32, #tpu.memory_space<vmem>>) attributes {dimension_semantics = [#tpu.dimension_semantics<parallel>], iteration_bounds = array<i64: 1>, scalar_prefetch = 0 : i64, scratch_operands = 0 : i64, tpu.core_type = #tpu.core_type<tc>, window_params = [{transform_indices = @transform_0, window_bounds = array<i64: 8, 16>}, {pipeline_mode = #tpu.pipeline_mode<synchronous>, transform_indices = @transform_1, window_bounds = array<i64: 16, 256>}, {pipeline_mode = #tpu.pipeline_mode<synchronous>, transform_indices = @transform_2, window_bounds = array<i64: 1, 256>}, {pipeline_mode = #tpu.pipeline_mode<synchronous>, transform_indices = @transform_3, window_bounds = array<i64: 128, 128>}, {pipeline_mode = #tpu.pipeline_mode<synchronous>, transform_indices = @transform_4, window_bounds = array<i64: 1, 128>}, {pipeline_mode = #tpu.pipeline_mode<synchronous>, transform_indices = @transform_5, window_bounds = array<i64: 1, 128>}, {transform_indices = @transform_6, window_bounds = array<i64: 1>}, {transform_indices = @transform_7, window_bounds = array<i64: 8, 128>}]} {
    %c0 = arith.constant 0 : index
    %c0_0 = arith.constant 0 : index
    %0 = vector.load %arg1[%c0, %c0_0] : memref<8x16xf32, #tpu.memory_space<vmem>>, vector<8x16xf32>
    %c0_1 = arith.constant 0 : index
    %c0_2 = arith.constant 0 : index
    %1 = vector.load %arg2[%c0_1, %c0_2] : memref<16x256xf32, #tpu.memory_space<vmem>>, vector<16x256xf32>
    %cst = arith.constant dense<0.000000e+00> : vector<8x256xf32>
    %2 = tpu.matmul %0, %1, %cst {dimension_numbers = #tpu.dot_dimension_numbers<[1], [0], [0], [1], [0, 0, 1, 1], [], []>} : vector<8x16xf32>, vector<16x256xf32>, vector<8x256xf32> -> vector<8x256xf32>
    %c0_3 = arith.constant 0 : index
    %c0_4 = arith.constant 0 : index
    %3 = vector.load %arg3[%c0_3, %c0_4] : memref<1x256xf32, #tpu.memory_space<vmem>>, vector<1x256xf32>
    %4 = vector.broadcast %3 : vector<1x256xf32> to vector<8x256xf32>
    %5 = arith.addf %2, %4 : vector<8x256xf32>
    %cst_5 = arith.constant 0.000000e+00 : f32
    %6 = vector.broadcast %cst_5 : f32 to vector<8x256xf32>
    %7 = arith.maximumf %5, %6 : vector<8x256xf32>
    %8 = vector.extract_strided_slice %7 {offsets = [0, 0], sizes = [8, 128], strides = [1, 1]} : vector<8x256xf32> to vector<8x128xf32>
    %9 = vector.extract_strided_slice %7 {offsets = [0, 128], sizes = [8, 128], strides = [1, 1]} : vector<8x256xf32> to vector<8x128xf32>
    %c0_6 = arith.constant 0 : index
    %c0_7 = arith.constant 0 : index
    %10 = vector.load %arg4[%c0_6, %c0_7] : memref<128x128xf32, #tpu.memory_space<vmem>>, vector<128x128xf32>
    %cst_8 = arith.constant dense<0.000000e+00> : vector<8x128xf32>
    %11 = tpu.matmul %8, %10, %cst_8 {dimension_numbers = #tpu.dot_dimension_numbers<[1], [0], [0], [1], [0, 0, 1, 1], [], []>} : vector<8x128xf32>, vector<128x128xf32>, vector<8x128xf32> -> vector<8x128xf32>
    %c0_9 = arith.constant 0 : index
    %c0_10 = arith.constant 0 : index
    %12 = vector.load %arg5[%c0_9, %c0_10] : memref<1x128xf32, #tpu.memory_space<vmem>>, vector<1x128xf32>
    %13 = vector.broadcast %12 : vector<1x128xf32> to vector<8x128xf32>
    %14 = arith.addf %11, %13 : vector<8x128xf32>
    %c0_11 = arith.constant 0 : index
    %c0_12 = arith.constant 0 : index
    %15 = vector.load %arg6[%c0_11, %c0_12] : memref<1x128xf32, #tpu.memory_space<vmem>>, vector<1x128xf32>
    %16 = vector.broadcast %15 : vector<1x128xf32> to vector<8x128xf32>
    %17 = arith.mulf %9, %16 : vector<8x128xf32>
    %cst_13 = arith.constant dense<0.000000e+00> : vector<8xf32>
    %18 = vector.multi_reduction <add>, %17, %cst_13 [1] : vector<8x128xf32> to vector<8xf32>
    %19 = vector.shape_cast %18 : vector<8xf32> to vector<8x1xf32>
    %c0_14 = arith.constant 0 : index
    %20 = memref.load %arg7[%c0_14] : memref<1xf32, #tpu.memory_space<smem>>
    %21 = vector.broadcast %20 : f32 to vector<8x1xf32>
    %22 = arith.addf %19, %21 : vector<8x1xf32>
    %cst_15 = arith.constant dense<0.000000e+00> : vector<8xf32>
    %23 = vector.multi_reduction <add>, %14, %cst_15 [1] : vector<8x128xf32> to vector<8xf32>
    %24 = vector.shape_cast %23 : vector<8xf32> to vector<8x1xf32>
    %cst_16 = arith.constant 1.250000e-01 : f32
    %25 = vector.broadcast %cst_16 : f32 to vector<8x1xf32>
    %26 = arith.mulf %24, %25 : vector<8x1xf32>
    %27 = vector.broadcast %22 : vector<8x1xf32> to vector<8x128xf32>
    %28 = arith.addf %27, %14 : vector<8x128xf32>
    %29 = vector.broadcast %26 : vector<8x1xf32> to vector<8x128xf32>
    %30 = arith.subf %28, %29 : vector<8x128xf32>
    %c0_17 = arith.constant 0 : index
    %c0_18 = arith.constant 0 : index
    %31 = vector.load %arg8[%c0_17, %c0_18] : memref<8x128xf32, #tpu.memory_space<vmem>>, vector<8x128xf32>
    tpu.vector_store %arg8[%c0_17, %c0_18], %30 {strides = array<i32>} : memref<8x128xf32, #tpu.memory_space<vmem>>, vector<8x128xf32>,
    return
  }
  func.func @transform_0(%arg0: i32) -> (i32, i32) {
    %c0_i32 = arith.constant 0 : i32
    %c0_i32_0 = arith.constant 0 : i32
    return %arg0, %c0_i32 : i32, i32
  }
  func.func @transform_1(%arg0: i32) -> (i32, i32) {
    %c0_i32 = arith.constant 0 : i32
    %c0_i32_0 = arith.constant 0 : i32
    %c0_i32_1 = arith.constant 0 : i32
    return %c0_i32, %c0_i32_0 : i32, i32
  }
  func.func @transform_2(%arg0: i32) -> (i32, i32) {
    %c0_i32 = arith.constant 0 : i32
    %c0_i32_0 = arith.constant 0 : i32
    %c0_i32_1 = arith.constant 0 : i32
    return %c0_i32, %c0_i32_0 : i32, i32
  }
  func.func @transform_3(%arg0: i32) -> (i32, i32) {
    %c0_i32 = arith.constant 0 : i32
    %c0_i32_0 = arith.constant 0 : i32
    %c0_i32_1 = arith.constant 0 : i32
    return %c0_i32, %c0_i32_0 : i32, i32
  }
  func.func @transform_4(%arg0: i32) -> (i32, i32) {
    %c0_i32 = arith.constant 0 : i32
    %c0_i32_0 = arith.constant 0 : i32
    %c0_i32_1 = arith.constant 0 : i32
    return %c0_i32, %c0_i32_0 : i32, i32
  }
  func.func @transform_5(%arg0: i32) -> (i32, i32) {
    %c0_i32 = arith.constant 0 : i32
    %c0_i32_0 = arith.constant 0 : i32
    %c0_i32_1 = arith.constant 0 : i32
    return %c0_i32, %c0_i32_0 : i32, i32
  }
  func.func @transform_6(%arg0: i32) -> i32 {
    %c0_i32 = arith.constant 0 : i32
    %c0_i32_0 = arith.constant 0 : i32
    return %c0_i32 : i32
  }
  func.func @transform_7(%arg0: i32) -> (i32, i32) {
    %c0_i32 = arith.constant 0 : i32
    %c0_i32_0 = arith.constant 0 : i32
    return %arg0, %c0_i32 : i32, i32
  }
}

</mosaic_0001>

<bundles_post_ra>
// kernel: tpu_custom_call.1
= control target key start
LH: loop header
LB: loop body
LE: loop exit
PB: predicated region body
PF: predicated region fallthrough
CT: control target
= control target key end

     0   :  { %13 = vsyncpa [#allocation4], 0  ;;  %s514_s0 = inlined_call_operand.hbm [shape: f32[8,16], index: 0, kind: input, shape index: {}]   ;;  %s515_s1 = inlined_call_operand.hbm [shape: f32[16,256], index: 1, kind: input, shape index: {}]   ;;  %s516_s2 = inlined_call_operand.vmem [shape: f32[1,256], index: 2, kind: input, shape index: {}]   ;;  %s517_s3 = inlined_call_operand.hbm [shape: f32[128,128], index: 3, kind: input, shape index: {}]   ;;  %s518_s4 = inlined_call_operand.vmem [shape: f32[1,128], index: 4, kind: input, shape index: {}]   ;;  %s519_s5 = inlined_call_operand.vmem [shape: f32[1,128], index: 5, kind: input, shape index: {}]   ;;  %s520_s6 = inlined_call_operand.<no memory space> [shape: f32[1], index: 6, kind: input, shape index: {}]   ;;  %s521_s7 = inlined_call_operand.hbm [shape: f32[8,128], index: 7, kind: output, shape index: {}]  }
   0x1   :  { %14 = vsyncpa [#allocation7], 0 }
   0x2   :  { %15 = vsyncpa [#allocation5], 0  ;;  %s440_s24 = smov [#allocation6]  }
   0x3   :  { %s31_s25 = sshll.u32 %s440_s24, 4  ;;  %s32_s25 = int_to_ptr.vmem [resolvable:$true] %s31_s25 }
   0x4   :  { %s362_s26 = scalar_lea.vmem %s32_s25, 512  ;;  %p367_p1 = scmp.lt.s32.totalorder %s32_s25, %s32_s25 }
   0x5   :  { %p363_p0 = scmp.ne.s32.totalorder %s32_s25, %s362_s26  ;;  %p368_p2 = scmp.lt.s32.totalorder %s362_s26, %s362_s26 }
   0x7   :  { %p369_p3 = por %p368_p2, %p367_p1 }
   0x9   :  { %p370_p4 = pnand %p369_p3, %p363_p0 }
   0xb   :  { %373 = shalt.err (!%p370_p4)
}
   0xc   :  { %s441_s27 = smov 256   ;;  %s442_s28 = smov 16  }
   0xd   :  { %37 = dma.hbm_to_vmem [thread:$0]  %s515_s1, 512, %s32_s25, [#allocation7], %s441_s27, %s441_s27, %s442_s28  }
   0xe   :  { %s443_s8 = smov [#allocation3]   ;;  %s444_s10 = smov [#allocation8]  }
   0xf   :  { %s22_s9 = sshll.u32 %s443_s8, 4  ;;  %s45_s11 = sshll.u32 %s444_s10, 4  ;;  %s23_s9 = int_to_ptr.vmem [resolvable:$true] %s22_s9  ;;  %s46_s11 = int_to_ptr.vmem [resolvable:$true] %s45_s11 }
  0x10   :  { %s382_s12 = scalar_lea.vmem %s23_s9, 128  ;;  %p387_p6 = scmp.lt.s32.totalorder %s23_s9, %s23_s9 }
  0x11   :  { %p383_p5 = scmp.ne.s32.totalorder %s23_s9, %s382_s12  ;;  %p388_p7 = scmp.lt.s32.totalorder %s382_s12, %s382_s12 }
  0x13   :  { %p389_p8 = por %p388_p7, %p387_p6 }
  0x15   :  { %p390_p9 = pnand %p389_p8, %p383_p5 }
  0x17   :  { %393 = shalt.err (!%p390_p9)
}
  0x18   :  { %25 = dma.hbm_to_vmem [thread:$0]  %s514_s0, 128, %s23_s9, [#allocation4]  }
  0x19   :  { %s402_s15 = scalar_lea.vmem %s46_s11, 2048  ;;  %p407_p11 = scmp.lt.s32.totalorder %s46_s11, %s46_s11 }
  0x1a   :  { %p403_p10 = scmp.ne.s32.totalorder %s46_s11, %s402_s15  ;;  %p408_p12 = scmp.lt.s32.totalorder %s402_s15, %s402_s15 }
  0x1c   :  { %p409_p13 = por %p408_p12, %p407_p11 }
  0x1e   :  { %p410_p0 = pnand %p409_p13, %p403_p10 }
  0x20   :  { %413 = shalt.err (!%p410_p0)
}
  0x21   :  { %s445_s1 = smov 128   ;;  %s446_s16 = smov 8  }
  0x22   :  { %51 = dma.hbm_to_vmem [thread:$0]  %s517_s3, 2048, %s46_s11, [#allocation7], %s445_s1, %s445_s1, %s446_s16  }
  0x23   :  { %434 = dma.done.wait [#allocation4], 128  }
  0x24   :  { %435 = vsyncadd [#allocation4], 4294967168 }
  0x25   :  { %436 = dma.done.wait [#allocation7], 2560  }
  0x26   :  { %437 = vsyncadd [#allocation7], 4294964736  ;;  %v447_v0 = vmov 0.0   ;;  %v71_v1 = vld [vmem:[#allocation6 + $0x18] sm:$0xff]  ;;  %v70_v2 = vld [vmem:[#allocation6 + $0x10] sm:$0xff]  ;;  %vm84_vm0 = vcmask 130048   ;;  %v74_v22 = vlaneseq  ;;  %v265_v41 = vstv %s520_s6 }
  0x27   :  { %152 = vmatprep.mubr.f32.mxu0 %v447_v0  ;;  %309 = vmatprep.subr.mxu1 %v447_v0  ;;  %v69_v3 = vld [vmem:[#allocation6 + $0x8] sm:$0xff]  ;;  %v68_v4 = vld [vmem:[#allocation6] sm:$0xff]  ;;  %v176_v5 = vld [vmem:[#allocation8 + $0x78] sm:$0xff]  ;;  %vm448_vm1 = vmmov 0  }
  0x28   :  { %116 = vmatprep.subr.mxu0 %v71_v1  ;;  %v67_v6 = vld [vmem:[#allocation3] sm:$0xff]  ;;  %310 = vmatpush3.msra.mxu1 %v176_v5  ;;  %v175_v7 = vld [vmem:[#allocation8 + $0x70] sm:$0xff]  ;;  %v174_v8 = vld [vmem:[#allocation8 + $0x68] sm:$0xff]  ;;  %v75_v23 = vshrl.u32 %v74_v22, 7 }
  0x29   :  { %117 = vmatpush1.msra.mxu0 %v70_v2  ;;  %311 = vmatprep.subr.mxu1 %v447_v0  ;;  %v173_v9 = vld [vmem:[#allocation8 + $0x60] sm:$0xff]  ;;  %v172_v10 = vld [vmem:[#allocation8 + $0x58] sm:$0xff]  ;;  %v171_v11 = vld [vmem:[#allocation8 + $0x50] sm:$0xff] }
  0x2a   :  { %118 = vmatprep.subr.mxu0 %v69_v3  ;;  %312 = vmatpush3.msra.mxu1 %v175_v7  ;;  %v170_v12 = vld [vmem:[#allocation8 + $0x48] sm:$0xff]  ;;  %v169_v13 = vld [vmem:[#allocation8 + $0x40] sm:$0xff]  ;;  %v168_v14 = vld [vmem:[#allocation8 + $0x38] sm:$0xff]  ;;  %v76_v24 = vsub.s32 0, %v75_v23  ;;  %v80_v26 = vsub.s32 1, %v75_v23 }
  0x2b   :  { %119 = vmatpush1.msra.mxu0 %v68_v4  ;;  %313 = vmatprep.subr.mxu1 %v447_v0  ;;  %v167_v15 = vld [vmem:[#allocation8 + $0x30] sm:$0xff]  ;;  %v166_v16 = vld [vmem:[#allocation8 + $0x28] sm:$0xff]  ;;  %v165_v17 = vld [vmem:[#allocation8 + $0x20] sm:$0xff] }
  0x2c   :  { %289 = vmatmul.mubr.msk.f32.vlgmr.msra.gmra.mxu0 %vm84_vm0, %v67_v6  ;;  %314 = vmatpush3.msra.mxu1 %v174_v8  ;;  %v164_v18 = vld [vmem:[#allocation8 + $0x18] sm:$0xff]  ;;  %v163_v19 = vld [vmem:[#allocation8 + $0x10] sm:$0xff]  ;;  %v162_v20 = vld [vmem:[#allocation8 + $0x8] sm:$0xff] }
  0x2d   :  { %315 = vmatprep.subr.mxu1 %v447_v0  ;;  %v161_v21 = vld [vmem:[#allocation8] sm:$0xff]  ;;  %341 = vmatprep.mubr.msk.f32.mxu1 %vm448_vm1, %v447_v0  ;;  %v72_v25 = vld [vmem:[%s516_s2] sm:$0x3] }
  0x2e   :  { %316 = vmatpush3.msra.mxu1 %v173_v9  ;;  %v77_v27 = vrot.slane %v72_v25, %v76_v24  ;;  %v81_v28 = vrot.slane %v72_v25, %v80_v26  ;;  %v291_v34 = vld [vmem:[%s519_s5] ss:$0 sm:$0xff]  ;;  %s449_s5 = smov [#allocation9]  }
  0x2f   :  { %317 = vmatprep.subr.mxu1 %v447_v0  ;;  %v290_v37 = vld [vmem:[%s518_s4] ss:$0 sm:$0xff]  ;;  %s279_s24 = sshll.u32 %s449_s5, 4  ;;  %s280_s24 = int_to_ptr.vmem [resolvable:$true] %s279_s24 }
  0x30   :  { %318 = vmatpush3.msra.mxu1 %v172_v10  ;;  %s414_s25 = scalar_lea.vmem %s280_s24, 128  ;;  %p419_p2 = scmp.lt.s32.totalorder %s280_s24, %s280_s24 }
  0x31   :  { %319 = vmatprep.subr.mxu1 %v447_v0  ;;  %p415_p1 = scmp.ne.s32.totalorder %s280_s24, %s414_s25  ;;  %p420_p3 = scmp.lt.s32.totalorder %s414_s25, %s414_s25 }
  0x32   :  { %320 = vmatpush3.msra.mxu1 %v171_v11 }
  0x33   :  { %321 = vmatprep.subr.mxu1 %v447_v0  ;;  %p421_p4 = por %p420_p3, %p419_p2 }
  0x34   :  { %322 = vmatpush3.msra.mxu1 %v170_v12 }
  0x35   :  { %323 = vmatprep.subr.mxu1 %v447_v0  ;;  %p422_p5 = pnand %p421_p4, %p415_p1 }
  0x36   :  { %324 = vmatpush3.msra.mxu1 %v169_v13 }
  0x37   :  { %325 = vmatprep.subr.mxu1 %v447_v0 }
  0x38   :  { %326 = vmatpush3.msra.mxu1 %v168_v14 }
  0x39   :  { %327 = vmatprep.subr.mxu1 %v447_v0 }
  0x3a   :  { %328 = vmatpush3.msra.mxu1 %v167_v15 }
  0x3b   :  { %329 = vmatprep.subr.mxu1 %v447_v0 }
  0x3c   :  { %330 = vmatpush3.msra.mxu1 %v166_v16 }
  0x3d   :  { %331 = vmatprep.subr.mxu1 %v447_v0 }
  0x3e   :  { %332 = vmatpush3.msra.mxu1 %v165_v17 }
  0x3f   :  { %333 = vmatprep.subr.mxu1 %v447_v0 }
  0x40   :  { %334 = vmatpush3.msra.mxu1 %v164_v18 }
  0x41   :  { %335 = vmatprep.subr.mxu1 %v447_v0 }
  0x42   :  { %336 = vmatpush3.msra.mxu1 %v163_v19 }
  0x43   :  { %337 = vmatprep.subr.mxu1 %v447_v0 }
  0x44   :  { %338 = vmatpush3.msra.mxu1 %v162_v20 }
  0x45   :  { %339 = vmatprep.subr.mxu1 %v447_v0 }
  0x46   :  { %340 = vmatpush3.msra.mxu1 %v161_v21 }
  0xec   :  { %v154_v29 = vpop.f32.mrf.mxu0 }
  0xed   :  { %v155_v30 = vadd.f32 %v154_v29, %v77_v27 }
  0xee   :  { %v156_v31 = vpop.f32.mrf.mxu0 }
  0xef   :  { %v159_v32 = vmax.f32 %v155_v30, 0.0  ;;  %v157_v33 = vadd.f32 %v156_v31, %v81_v28 }
  0xf1   :  { %v160_v35 = vmax.f32 %v157_v33, 0.0  ;;  %342 = vmatmul.mubr.f32.vlgmr.msra.gmra.mxu1 %v159_v32 }
  0xf3   :  { %v261_v36 = vmul.f32 %v291_v34, %v160_v35 }
  0xf5   :  { %262 = vadd.xlane.f32.xlu0 %v261_v36 }
 0x17e   :  { %v263_v42 = vpop.xlane.xlu0 %262 }
 0x17f   :  { %v266_v43 = vadd.f32 %v265_v41, %v263_v42 }
 0x1b1   :  { %v250_v38 = vpop.f32.mrf.mxu1 }
 0x1b2   :  { %v251_v39 = vadd.f32 %v290_v37, %v250_v38 }
 0x1b3   :  { %v343_v40 = vpop.f32.mrf.mxu1 }
 0x1b4   :  { %267 = vadd.xlane.f32.xlu0 %v251_v39  ;;  %v270_v45 = vadd.f32 %v266_v43, %v251_v39 }
 0x23d   :  { %v268_v44 = vpop.xlane.xlu0 %267 }
 0x23e   :  { %v269_v46 = vmul.f32 0.125, %v268_v44 }
 0x240   :  { %v271_v47 = vsub.f32 %v270_v45, %v269_v46 }
 0x242   :  { %272 = vst [vmem:[#allocation9] sm:$0xff] %v271_v47 }
 0x243   :  { %425 = shalt.err (!%p422_p5)
}
 0x244   :  { %282 = dma.vmem_to_hbm [thread:$0]  %s280_s24, 128, %s521_s7, [#allocation5]  }
 0x245   :  { %438 = dma.done.wait [#allocation5], 128  }
 0x246   :  { %439 = vsyncadd [#allocation5], 4294967168 }
 0x247   :  { %286 = vsyncpa [#allocation4], 1 }
 0x248   :  { %287 = vsyncpa [#allocation7], 1 }
 0x249   :  { %288 = vsyncpa [#allocation5], 1 }

</bundles_post_ra>
